<compile_context>
chip_gen: v7x
topology: tpu7x:2x2x1
jax: 0.10.0
libtpu: 0.0.40
codegen_flags: <defaults>
</compile_context>

<pallas_src>
import functools

import numpy as np

import jax
import jax.numpy as jnp
from jax.experimental import pallas as pl
from jax.experimental.pallas import tpu as pltpu


def _emma_train_kernel(*refs, g, compute_dtype):
    """One (TN, g*D) row tile.

    refs: x, scal, his_x[, expand], out_x, out_m
      scal packs the four per-row scalars [max_a | his_m | agg_n | inv_w], each g
      lanes wide.  expand (present iff g > 1) is the constant 0/1 (g, g*D) matrix
      mapping per-row coefficients to the lane-folded layout.
    """
    if g > 1:
        x_ref, scal_ref, his_x_ref, e_ref, out_x_ref, out_m_ref = refs
    else:
        x_ref, scal_ref, his_x_ref, out_x_ref, out_m_ref = refs

    scal = scal_ref[...]                          # (TN, 4*g), f32
    ma = scal[:, 0 * g:1 * g]                     # max_a
    hm = scal[:, 1 * g:2 * g]                     # his_m
    an = scal[:, 2 * g:3 * g]                     # agg_n
    iw = scal[:, 3 * g:4 * g]                     # inv_w

    beta = jnp.clip(1.0 - iw * an, 0.0, 1.0)
    max_m = jnp.maximum(ma, hm)

    dp = hm - max_m
    dp = jnp.where(jnp.isnan(dp), -jnp.inf, dp)   # nan_to_num_(-inf)
    p = jnp.exp(dp) * beta

    dq = ma - max_m
    dq = jnp.where(jnp.isnan(dq), -jnp.inf, dq)
    q = jnp.exp(dq)

    t = jnp.maximum(p + q, 1.0)                   # clamp_min_(1.0)
    pt = p / t                                    # (TN, g)
    qt = q / t

    out_m_ref[...] = (max_m + jnp.log(t)).astype(out_m_ref.dtype)

    if g == 1:
        # (TN, 1) broadcasts directly over the lane axis.
        p_full, q_full = pt, qt
    else:
        # Expand per-row coefficients across the g lane-folded rows on the
        # (otherwise idle) MXU: p_full[i, c] = pt[i, c // D].
        e = e_ref[...]                            # (g, g*D), 0/1 constant
        p_full = jnp.dot(pt, e, preferred_element_type=jnp.float32)
        q_full = jnp.dot(qt, e, preferred_element_type=jnp.float32)

    cd = compute_dtype
    x = x_ref[...].astype(cd)
    hx = his_x_ref[...].astype(cd)
    out_x_ref[...] = (hx * p_full.astype(cd) + x * q_full.astype(cd)).astype(out_x_ref.dtype)


def _choose_tile_rows(nf, df, slab_itemsize, sub_itemsize, min_steps=8):
    """Largest row tile such that each (tn, df) slab is <= ~4 MiB, tn divides nf,
    tn is a multiple of the packed-dtype sublane quantum, and (when nf allows)
    the grid has at least `min_steps` steps so v7x can shard the row axis across
    its 2 TensorCores.  Fallback: the whole array as one block (always legal)."""
    slab_bytes = 4 * 1024 * 1024
    cap = max(1, slab_bytes // max(df * slab_itemsize, 1))
    sub = {4: 8, 2: 16, 1: 32}.get(sub_itemsize, 8)
    if nf >= min_steps * sub:
        cap = min(cap, nf // min_steps)
    t = (min(cap, nf) // sub) * sub
    while t >= sub:
        if nf % t == 0:
            return t
        t -= sub
    return nf  # small / ragged nf: block_shape == full dim is always legal


@functools.partial(jax.jit, static_argnames=("training",))
def emma_attention(x, max_a, his_x, his_m, agg_n, inv_w, training=True):
    """Returns (new_his_x, new_his_m). Buffers are returned instead of mutated."""
    if not training:
        # eval mode: his_x.copy_(x); his_m.copy_(max_a)
        return x.astype(his_x.dtype), max_a.astype(his_m.dtype)

    N, D = x.shape
    out_dtype = his_x.dtype
    m_dtype = his_m.dtype

    # Lane-dense folding: fold g rows into the 128-lane axis when D < 128.
    if D < 128 and 128 % D == 0 and N % (128 // D) == 0:
        g = 128 // D
    else:
        g = 1
    nf, df = N // g, D * g

    xf = x.reshape(nf, df)
    hxf = his_x.reshape(nf, df)

    # Pack the four per-row scalars into one f32 sidecar: (nf, 4g).
    cols = [jnp.asarray(c, jnp.float32).reshape(nf, g)
            for c in (max_a, his_m, agg_n, inv_w)]
    scal = jnp.concatenate(cols, axis=1)

    itemsizes = [jnp.dtype(t).itemsize for t in (x.dtype, his_x.dtype, out_dtype)]
    tn = _choose_tile_rows(nf, df,
                           slab_itemsize=max(itemsizes),
                           sub_itemsize=min(itemsizes))
    grid = (nf // tn,)

    big_spec = pl.BlockSpec((tn, df), lambda i: (i, 0))
    scal_spec = pl.BlockSpec((tn, 4 * g), lambda i: (i, 0))
    m_spec = pl.BlockSpec((tn, g), lambda i: (i, 0))

    # Blend the big tiles in bf16 when both big inputs are bf16 (saves vreg/VALU
    # work on v6e/v7x; still correct elsewhere).  Scalar math stays f32.
    if x.dtype == jnp.bfloat16 and his_x.dtype == jnp.bfloat16:
        compute_dtype = jnp.bfloat16
    else:
        compute_dtype = jnp.float32

    kernel = functools.partial(_emma_train_kernel, g=g, compute_dtype=compute_dtype)

    operands = [xf, scal, hxf]
    in_specs = [big_spec, scal_spec, big_spec]
    if g > 1:
        # Static 0/1 expansion matrix: row r maps to lanes [r*D, (r+1)*D).
        e_np = np.zeros((g, df), np.float32)
        for r in range(g):
            e_np[r, r * D:(r + 1) * D] = 1.0
        operands.append(jnp.asarray(e_np))
        in_specs.append(pl.BlockSpec((g, df), lambda i: (0, 0)))

    out_xf, out_mf = pl.pallas_call(
        kernel,
        out_shape=(
            jax.ShapeDtypeStruct((nf, df), out_dtype),
            jax.ShapeDtypeStruct((nf, g), m_dtype),
        ),
        grid_spec=pltpu.PrefetchScalarGridSpec(
            num_scalar_prefetch=0,
            grid=grid,
            in_specs=in_specs,
            out_specs=[big_spec, m_spec],
        ),
        input_output_aliases={2: 0},  # his_x -> out_x (in-place buffer-update semantics)
        compiler_params=pltpu.CompilerParams(
            dimension_semantics=("parallel",),
            # ~24 MiB live with 4 MiB slabs; 48 MiB cap fits v7x's 64 MiB VMEM and is
            # load-bearing on v5e (16 MiB scoped default).
            vmem_limit_bytes=48 * 1024 * 1024,
        ),
    )(*operands)

    return out_xf.reshape(N, D), out_mf.reshape(N)


def _reference(x, max_a, his_x, his_m, agg_n, inv_w):
    beta = jnp.clip(1.0 - inv_w * agg_n, 0.0, 1.0)
    max_m = jnp.maximum(max_a, his_m)
    dp = his_m - max_m
    dp = jnp.where(jnp.isnan(dp), -jnp.inf, dp)
    p = jnp.exp(dp) * beta
    dq = max_a - max_m
    dq = jnp.where(jnp.isnan(dq), -jnp.inf, dq)
    q = jnp.exp(dq)
    t = jnp.maximum(p + q, 1.0)
    p = p / t
    q = q / t
    new_x = his_x * p[:, None] + x * q[:, None]
    new_m = max_m + jnp.log(t)
    return new_x, new_m


if __name__ == "__main__":
    key = jax.random.PRNGKey(0)

    def run_case(N, D, dtype=jnp.float32, atol=1e-5, rtol=1e-5):
        k = jax.random.fold_in(key, N * 1000 + D)
        k1, k2, k3, k4 = jax.random.split(k, 4)
        x = jax.random.normal(k1, (N, D), dtype=jnp.float32).astype(dtype)
        max_a = jax.random.normal(k2, (N,), dtype=jnp.float32)
        his_x = jax.random.normal(k3, (N, D), dtype=jnp.float32).astype(dtype)
        his_m = jax.random.normal(k4, (N,), dtype=jnp.float32)
        # some rows start with an "empty" history (-inf running max)
        his_m = his_m.at[0].set(-jnp.inf).at[N // 2].set(-jnp.inf)
        agg_n = jnp.arange(1, N + 1, dtype=jnp.float32)   # aggregation counts
        inv_w = jnp.full((N,), 0.25, dtype=jnp.float32)   # 1 / window

        out_x, out_m = emma_attention(x, max_a, his_x, his_m, agg_n, inv_w,
                                      training=True)
        jax.block_until_ready(out_x)
        jax.block_until_ready(out_m)

        ref_x, ref_m = _reference(x.astype(jnp.float32), max_a,
                                  his_x.astype(jnp.float32), his_m, agg_n, inv_w)
        assert jnp.allclose(out_x.astype(jnp.float32), ref_x,
                            atol=atol, rtol=rtol), (N, D, str(dtype))
        assert jnp.allclose(out_m, ref_m, atol=1e-5, rtol=1e-5), (N, D, str(dtype))

        # eval-mode path (trivial copy semantics)
        ex, em = emma_attention(x, max_a, his_x, his_m, agg_n, inv_w, training=False)
        jax.block_until_ready(ex)
        assert jnp.allclose(ex.astype(jnp.float32), x.astype(jnp.float32)), (N, D)
        assert jnp.allclose(em, max_a), (N, D)

    run_case(16, 32)      # D < 128  : lane-folded (g=4), MXU coefficient expansion
    run_case(16, 128)     # D == 128 : unfolded path (g=1)
    run_case(16, 48)      # 128 % D != 0 : unfolded fallback
    run_case(2048, 16)    # folded (g=8), multi-step grid (>= 8 parallel steps)
    run_case(256, 32, dtype=jnp.bfloat16, atol=1e-1, rtol=5e-2)  # bf16 blend path

    print("KERNEL_OK")
</pallas_src>

<mosaic_0001>
module attributes {stable_mosaic.version = 11 : i64} {
  func.func @_emma_train_kernel(%arg0: i32, %arg1: memref<4x128xf32, #tpu.memory_space<vmem>>, %arg2: memref<4x16xf32, #tpu.memory_space<vmem>>, %arg3: memref<4x128xf32, #tpu.memory_space<vmem>>, %arg4: memref<4x128xf32, #tpu.memory_space<vmem>>, %arg5: memref<4x128xf32, #tpu.memory_space<vmem>>, %arg6: memref<4x4xf32, #tpu.memory_space<vmem>>) attributes {dimension_semantics = [#tpu.dimension_semantics<parallel>], iteration_bounds = array<i64: 1>, scalar_prefetch = 0 : i64, scratch_operands = 0 : i64, tpu.core_type = #tpu.core_type<tc>, window_params = [{transform_indices = @transform_0, window_bounds = array<i64: 4, 128>}, {transform_indices = @transform_1, window_bounds = array<i64: 4, 16>}, {transform_indices = @transform_2, window_bounds = array<i64: 4, 128>}, {pipeline_mode = #tpu.pipeline_mode<synchronous>, transform_indices = @transform_3, window_bounds = array<i64: 4, 128>}, {transform_indices = @transform_4, window_bounds = array<i64: 4, 128>}, {transform_indices = @transform_5, window_bounds = array<i64: 4, 4>}]} {
    %c0 = arith.constant 0 : index
    %c0_0 = arith.constant 0 : index
    %0 = vector.load %arg2[%c0, %c0_0] : memref<4x16xf32, #tpu.memory_space<vmem>>, vector<4x16xf32>
    %1 = vector.extract_strided_slice %0 {offsets = [0, 0], sizes = [4, 4], strides = [1, 1]} : vector<4x16xf32> to vector<4x4xf32>
    %2 = vector.extract_strided_slice %0 {offsets = [0, 4], sizes = [4, 4], strides = [1, 1]} : vector<4x16xf32> to vector<4x4xf32>
    %3 = vector.extract_strided_slice %0 {offsets = [0, 8], sizes = [4, 4], strides = [1, 1]} : vector<4x16xf32> to vector<4x4xf32>
    %4 = vector.extract_strided_slice %0 {offsets = [0, 12], sizes = [4, 4], strides = [1, 1]} : vector<4x16xf32> to vector<4x4xf32>
    %5 = arith.mulf %4, %3 : vector<4x4xf32>
    %cst = arith.constant 1.000000e+00 : f32
    %6 = vector.broadcast %cst : f32 to vector<4x4xf32>
    %7 = arith.subf %6, %5 : vector<4x4xf32>
    %cst_1 = arith.constant 0.000000e+00 : f32
    %cst_2 = arith.constant 1.000000e+00 : f32
    %8 = vector.broadcast %cst_1 : f32 to vector<4x4xf32>
    %9 = arith.maximumf %8, %7 : vector<4x4xf32>
    %10 = vector.broadcast %cst_2 : f32 to vector<4x4xf32>
    %11 = arith.minimumf %10, %9 : vector<4x4xf32>
    %12 = arith.maximumf %1, %2 : vector<4x4xf32>
    %13 = arith.subf %2, %12 : vector<4x4xf32>
    %14 = arith.cmpf one, %13, %13 : vector<4x4xf32>
    %cst_3 = arith.constant 0xFF800000 : f32
    %15 = vector.broadcast %cst_3 : f32 to vector<4x4xf32>
    %16 = arith.select %14, %15, %13 : vector<4x4xi1>, vector<4x4xf32>
    %17 = math.exp %16 : vector<4x4xf32>
    %18 = arith.mulf %17, %11 : vector<4x4xf32>
    %19 = arith.subf %1, %12 : vector<4x4xf32>
    %20 = arith.cmpf one, %19, %19 : vector<4x4xf32>
    %cst_4 = arith.constant 0xFF800000 : f32
    %21 = vector.broadcast %cst_4 : f32 to vector<4x4xf32>
    %22 = arith.select %20, %21, %19 : vector<4x4xi1>, vector<4x4xf32>
    %23 = math.exp %22 : vector<4x4xf32>
    %24 = arith.addf %18, %23 : vector<4x4xf32>
    %cst_5 = arith.constant 1.000000e+00 : f32
    %25 = vector.broadcast %cst_5 : f32 to vector<4x4xf32>
    %26 = arith.maximumf %24, %25 : vector<4x4xf32>
    %27 = arith.divf %18, %26 : vector<4x4xf32>
    %28 = arith.divf %23, %26 : vector<4x4xf32>
    %29 = math.log %26 : vector<4x4xf32>
    %30 = arith.addf %12, %29 : vector<4x4xf32>
    %c0_6 = arith.constant 0 : index
    %c0_7 = arith.constant 0 : index
    %31 = vector.load %arg6[%c0_6, %c0_7] : memref<4x4xf32, #tpu.memory_space<vmem>>, vector<4x4xf32>
    tpu.vector_store %arg6[%c0_6, %c0_7], %30 {strides = array<i32>} : memref<4x4xf32, #tpu.memory_space<vmem>>, vector<4x4xf32>,
    %c0_8 = arith.constant 0 : index
    %c0_9 = arith.constant 0 : index
    %32 = vector.load %arg4[%c0_8, %c0_9] : memref<4x128xf32, #tpu.memory_space<vmem>>, vector<4x128xf32>
    %cst_10 = arith.constant dense<0.000000e+00> : vector<4x128xf32>
    %33 = tpu.matmul %27, %32, %cst_10 {dimension_numbers = #tpu.dot_dimension_numbers<[1], [0], [0], [1], [0, 0, 1, 1], [], []>} : vector<4x4xf32>, vector<4x128xf32>, vector<4x128xf32> -> vector<4x128xf32>
    %cst_11 = arith.constant dense<0.000000e+00> : vector<4x128xf32>
    %34 = tpu.matmul %28, %32, %cst_11 {dimension_numbers = #tpu.dot_dimension_numbers<[1], [0], [0], [1], [0, 0, 1, 1], [], []>} : vector<4x4xf32>, vector<4x128xf32>, vector<4x128xf32> -> vector<4x128xf32>
    %c0_12 = arith.constant 0 : index
    %c0_13 = arith.constant 0 : index
    %35 = vector.load %arg1[%c0_12, %c0_13] : memref<4x128xf32, #tpu.memory_space<vmem>>, vector<4x128xf32>
    %c0_14 = arith.constant 0 : index
    %c0_15 = arith.constant 0 : index
    %36 = vector.load %arg3[%c0_14, %c0_15] : memref<4x128xf32, #tpu.memory_space<vmem>>, vector<4x128xf32>
    %37 = arith.mulf %36, %33 : vector<4x128xf32>
    %38 = arith.mulf %35, %34 : vector<4x128xf32>
    %39 = arith.addf %37, %38 : vector<4x128xf32>
    %c0_16 = arith.constant 0 : index
    %c0_17 = arith.constant 0 : index
    %40 = vector.load %arg5[%c0_16, %c0_17] : memref<4x128xf32, #tpu.memory_space<vmem>>, vector<4x128xf32>
    tpu.vector_store %arg5[%c0_16, %c0_17], %39 {strides = array<i32>} : memref<4x128xf32, #tpu.memory_space<vmem>>, vector<4x128xf32>,
    return
  }
  func.func @transform_0(%arg0: i32) -> (i32, i32) {
    %c0_i32 = arith.constant 0 : i32
    %c0_i32_0 = arith.constant 0 : i32
    return %arg0, %c0_i32 : i32, i32
  }
  func.func @transform_1(%arg0: i32) -> (i32, i32) {
    %c0_i32 = arith.constant 0 : i32
    %c0_i32_0 = arith.constant 0 : i32
    return %arg0, %c0_i32 : i32, i32
  }
  func.func @transform_2(%arg0: i32) -> (i32, i32) {
    %c0_i32 = arith.constant 0 : i32
    %c0_i32_0 = arith.constant 0 : i32
    return %arg0, %c0_i32 : i32, i32
  }
  func.func @transform_3(%arg0: i32) -> (i32, i32) {
    %c0_i32 = arith.constant 0 : i32
    %c0_i32_0 = arith.constant 0 : i32
    %c0_i32_1 = arith.constant 0 : i32
    return %c0_i32, %c0_i32_0 : i32, i32
  }
  func.func @transform_4(%arg0: i32) -> (i32, i32) {
    %c0_i32 = arith.constant 0 : i32
    %c0_i32_0 = arith.constant 0 : i32
    return %arg0, %c0_i32 : i32, i32
  }
  func.func @transform_5(%arg0: i32) -> (i32, i32) {
    %c0_i32 = arith.constant 0 : i32
    %c0_i32_0 = arith.constant 0 : i32
    return %arg0, %c0_i32 : i32, i32
  }
}

</mosaic_0001>

<bundles_post_ra>
// kernel: emma_attention.1
= control target key start
LH: loop header
LB: loop body
LE: loop exit
PB: predicated region body
PF: predicated region fallthrough
CT: control target
= control target key end

     0   :  { %s275_s20 = smov 124   ;;  %s276_s21 = smov 4   ;;  %vm81_vm2 = vcmask 1043456   ;;  %v278_v16 = vmov 0.0   ;;  %vm279_vm3 = vmmov 0   ;;  %vm78_vm4 = vcmask 31744   ;;  %s332_s1 = inlined_call_operand.vmem [shape: f32[4,16], index: 1, kind: input, shape index: {}]   ;;  %s333_s3 = inlined_call_operand.vmem [shape: f32[4,128], index: 3, kind: input, shape index: {}]   ;;  %s334_s5 = inlined_call_operand.vmem [shape: f32[4,4], index: 5, kind: output, shape index: {1}]   ;;  %s335_s2 = inlined_call_operand.vmem [shape: f32[4,128], index: 2, kind: input, shape index: {}, may-alias: {2,4}]   ;;  %s336_s0 = inlined_call_operand.vmem [shape: f32[4,128], index: 0, kind: input, shape index: {}]   ;;  %s337_s4 = inlined_call_operand.vmem [shape: f32[4,128], index: 4, kind: output, shape index: {0}, may-alias: {2,4}]  }
   0x1   :  { %v19_v0 = vld [vmem:[%s332_s1] sm:$0xf]  ;;  %s277_s22 = smov 120   ;;  %250 = vmatprep.subr.mxu0 %v278_v16  ;;  %255 = vmatprep.subr.mxu1 %v278_v16  ;;  %vm72_vm5 = vcmask 27648  }
   0x2   :  { %28 = vrot.lane.b32.xlu0 %v19_v0, %s275_s20  ;;  %v74_v17 = vld [vmem:[%s333_s3] sm:$0xf]  ;;  %252 = vmatprep.mubr.msk.f32.mxu0 %vm279_vm3, %v278_v16 }
   0x3   :  { %251 = vmatpush3.msk.msra.mxu0 %vm81_vm2, %v74_v17  ;;  %256 = vmatpush3.msk.msra.mxu1 %vm81_vm2, %v74_v17  ;;  %v229_v34 = vld [vmem:[%s335_s2] sm:$0xf] }
   0x4   :  { %257 = vmatprep.mubr.msk.f32.mxu1 %vm279_vm3, %v278_v16  ;;  %v228_v35 = vld [vmem:[%s336_s0] sm:$0xf] }
   0x6   :  { %21 = vrot.lane.b32.xlu0 %v19_v0, %s276_s21 }
  0x74   :  { %v29_v1 = vpop.permute.xlu0 %28 }
  0x75   :  { %v31_v2 = vmax.f32 %v19_v0, %v29_v1 }
  0x77   :  { %v46_v3 = vsub.f32 %v19_v0, %v31_v2  ;;  %33 = vrot.lane.b32.xlu1 %v31_v2, %s276_s21 }
  0x78   :  { %v22_v4 = vpop.permute.xlu0 %21 }
  0x79   :  { %vm47_vm0 = vcmp.ne.f32.partialorder %v46_v3, %v46_v3  ;;  %v24_v5 = vmul.f32 %v22_v4, %v19_v0 }
  0x7a   :  { %v48_v6 = vsel %vm47_vm0, -inf, %v46_v3 }
  0x7b   :  { %v49_v7 = vmul.f32 1.442695, %v48_v6  ;;  %v25_v8 = vsub.f32 1.0, %v24_v5 }
  0x7d   :  { %265 = vpow2.f32 %v49_v7  ;;  %v26_v9 = vmax.f32 %v25_v8, 0.0 }
  0x7f   :  { %v27_v10 = vmin.f32 %v26_v9, 1.0 }
  0x81   :  { %42 = vrot.lane.b32.xlu1 %v27_v10, %s277_s22 }
  0x87   :  { %v266_v11 = vpop.eup %265 }
  0x88   :  { %52 = vrot.lane.b32.xlu0 %v266_v11, %s276_s21 }
  0xe9   :  { %v34_v12 = vpop.permute.xlu1 %33 }
  0xea   :  { %v36_v13 = vsub.f32 %v19_v0, %v34_v12 }
  0xec   :  { %vm37_vm1 = vcmp.ne.f32.partialorder %v36_v13, %v36_v13 }
  0xed   :  { %v38_v14 = vsel %vm37_vm1, -inf, %v36_v13 }
  0xee   :  { %v39_v15 = vmul.f32 1.442695, %v38_v14 }
  0xf0   :  { %267 = vpow2.f32 %v39_v15 }
  0xf3   :  { %v43_v18 = vpop.permute.xlu1 %42 }
  0xfa   :  { %v268_v19 = vpop.eup %267  ;;  %v53_v21 = vpop.permute.xlu0 %52 }
  0xfb   :  { %v45_v20 = vmul.f32 %v268_v19, %v43_v18 }
  0xfd   :  { %v55_v22 = vadd.f32 %v53_v21, %v45_v20 }
  0xff   :  { %v56_v23 = vmax.f32 %v55_v22, 1.0 }
 0x101   :  { %269 = vrcp.f32 %v56_v23  ;;  %60 = vrot.lane.b32.xlu1 %v56_v23, %s275_s20 }
 0x102   :  { %271 = vlog2.f32 %v56_v23 }
 0x10b   :  { %v270_v24 = vpop.eup %269 }
 0x10c   :  { %v272_v25 = vpop.eup %271  ;;  %v58_v26 = vmul.f32 %v270_v24, %v45_v20 }
 0x10d   :  { %v66_v27 = vmul.f32 0.6931472, %v272_v25 }
 0x10e   :  { %76 = vrot.lane.b32.xlu0 %v58_v26, %s275_s20 }
 0x10f   :  { %68 = vrot.lane.b32.xlu1 %v66_v27, %s275_s20 }
 0x173   :  { %v61_v28 = vpop.permute.xlu1 %60 }
 0x174   :  { %273 = vrcp.f32 %v61_v28 }
 0x17e   :  { %v274_v29 = vpop.eup %273 }
 0x17f   :  { %v64_v30 = vmul.f32 %v274_v29, %v266_v11 }
 0x180   :  { %v77_v31 = vpop.permute.xlu0 %76 }
 0x181   :  { %v69_v32 = vpop.permute.xlu1 %68  ;;  %253 = vmatmul.mubr.msk.f32.vlgmr.msra.gmra.mrb[0].mxu0 %vm78_vm4, %v77_v31  ;;  %258 = vmatmul.mubr.msk.f32.vlgmr.msra.gmra.mrb[0].mxu1 %vm78_vm4, %v64_v30 }
 0x182   :  { %v71_v33 = vadd.f32 %v69_v32, %v31_v2 }
 0x184   :  { %73 = vst.msk [vmem:[%s334_s5] sm:$0xf] %vm72_vm5, %v71_v33 }
 0x254   :  { %v151_v36 = vpop.f32.mrb[0].mxu0  ;;  %v224_v37 = vpop.f32.mrb[0].mxu1 }
 0x255   :  { %v230_v38 = vmul.f32 %v229_v34, %v151_v36  ;;  %v231_v39 = vmul.f32 %v228_v35, %v224_v37  ;;  %v254_v40 = vpop.f32.mrb[1].mxu0  ;;  %v259_v41 = vpop.f32.mrb[1].mxu1 }
 0x257   :  { %v232_v42 = vadd.f32 %v231_v39, %v230_v38 }
 0x259   :  { %233 = vst [vmem:[%s337_s4] sm:$0xf] %v232_v42 }

</bundles_post_ra>
